<compile_context>
chip_gen: v7x
topology: tpu7x:2x2x1
jax: 0.10.0
libtpu: 0.0.40
codegen_flags: <defaults>
</compile_context>

<pallas_src>
import jax
import jax.numpy as jnp
from jax.experimental import pallas as pl
from jax.experimental.pallas import tpu as pltpu


def _round_up(x, m):
    return (x + m - 1) // m * m


# ------------------------------ Pallas kernel -------------------------------

def _edge_transform_kernel(comp_ref, mask_ref, w_ref, b_ref, out_ref):
    """Fused per-edge linear transform + direction select.

    comp_ref : [tE, Din_pad]          (bf16)  composed edge features (u - e)
    mask_ref : [tE, 1]                (int32) 1 -> "incoming" relation (W_I half)
    w_ref    : [Din_pad, 2*Dout_pad]  (bf16)  [W_I | W_O]
    b_ref    : [1, 2*Dout_pad]        (f32)   [b_I | b_O]
    out_ref  : [tE, Dout_pad]         (f32)
    """
    y = jnp.dot(comp_ref[...], w_ref[...],
                preferred_element_type=jnp.float32) + b_ref[...]      # [tE, 2*Dp]
    d = out_ref.shape[-1]
    h_i = y[:, :d]                                                    # [tE, Dp]
    h_o = y[:, d:]                                                    # [tE, Dp]
    use_i = jnp.broadcast_to(mask_ref[...], h_i.shape) > 0
    out_ref[...] = jnp.where(use_i, h_i, h_o)


def compgcn_edge_transform(comp_h, mask, w_cat, b_cat, dout_pad, *, tile_e):
    e_pad, din_pad = comp_h.shape
    assert e_pad % tile_e == 0
    two_dp = w_cat.shape[1]
    return pl.pallas_call(
        _edge_transform_kernel,
        out_shape=jax.ShapeDtypeStruct((e_pad, dout_pad), jnp.float32),
        grid=(e_pad // tile_e,),
        in_specs=[
            pl.BlockSpec((tile_e, din_pad), lambda e: (e, 0)),   # comp_h tile
            pl.BlockSpec((tile_e, 1), lambda e: (e, 0)),         # direction mask
            pl.BlockSpec((din_pad, two_dp), lambda e: (0, 0)),   # fused weights (resident)
            pl.BlockSpec((1, two_dp), lambda e: (0, 0)),         # fused bias   (resident)
        ],
        out_specs=pl.BlockSpec((tile_e, dout_pad), lambda e: (e, 0)),
        compiler_params=pltpu.CompilerParams(
            dimension_semantics=("parallel",),      # edge tiles independent → megacore
            vmem_limit_bytes=32 * 1024 * 1024,      # explicit; safe on v7x's 64 MiB VMEM
        ),
    )(comp_h, mask, w_cat, b_cat)


# ----------------------------- forward wrapper -----------------------------

def comp_graph_conv_forward(src, dst, etype, n_feats, r_feats, num_rels, params,
                            *, block_e=512, compute_dtype=jnp.bfloat16):
    """comp_fn='sub', self_loop=False, batchnorm=False, activation=None."""
    n_nodes, din = n_feats.shape
    dout = params["W_I"].shape[1]
    n_edges = src.shape[0]

    din_pad = _round_up(din, 128)
    dout_pad = _round_up(dout, 128)
    tile_e = min(_round_up(block_e, 8), _round_up(n_edges, 8))
    e_pad = _round_up(n_edges, tile_e)

    # Fused, lane-padded weights: one MXU pass per edge instead of two.
    def _pad_w(w):
        return jnp.pad(w, ((0, din_pad - din), (0, dout_pad - dout)))

    def _pad_b(b):
        return jnp.pad(b, ((0, 0), (0, dout_pad - dout)))

    w_cat = jnp.concatenate([_pad_w(params["W_I"]), _pad_w(params["W_O"])],
                            axis=1).astype(compute_dtype)               # [Din_p, 2*Dout_p]
    b_cat = jnp.concatenate([_pad_b(params["b_I"]), _pad_b(params["b_O"])],
                            axis=1).astype(jnp.float32)                 # [1, 2*Dout_p]

    # XLA glue: gathers + 'sub' composition fuse into one gather-subtract, so
    # comp_h hits HBM exactly once (already in the bf16 compute dtype).
    src_p = jnp.pad(src, (0, e_pad - n_edges))
    et_p = jnp.pad(etype, (0, e_pad - n_edges))
    n_p = jnp.pad(n_feats, ((0, 0), (0, din_pad - din)))
    r_p = jnp.pad(r_feats, ((0, 0), (0, din_pad - din)))
    comp_h = (n_p[src_p] - r_p[et_p]).astype(compute_dtype)             # [e_pad, Din_p]
    mask = (et_p < (num_rels // 2)).astype(jnp.int32)[:, None]          # [e_pad, 1]
    # TODO(synk): the row gather itself could move in-kernel (manual DMA gather
    # with scalar-prefetched src/etype) to save one E*Din HBM round trip.

    new_h = compgcn_edge_transform(comp_h, mask, w_cat, b_cat, dout_pad,
                                   tile_e=tile_e)[:n_edges, :dout]      # [E, Dout]

    # Segment-mean aggregation (fn.mean over incoming edges): O(E*Dout)
    # scatter-add, replaces the dense N x E one-hot matmul of the old kernel.
    seg = jnp.zeros((n_nodes, dout), jnp.float32).at[dst].add(new_h)
    deg = jnp.zeros((n_nodes,), jnp.float32).at[dst].add(1.0)
    n_out = seg / jnp.maximum(deg, 1.0)[:, None]
    # TODO(synk): nn.Dropout applied as identity (eval-mode semantics).

    # W_R on the tiny relation table: left to XLA per the perf review (a
    # separate pallas_call only adds launch/DMA overhead for negligible work).
    r_out = r_feats @ params["W_R"] + params["b_R"]
    return n_out, r_out


# ----------------------------- parameter init ------------------------------

def init_params(key, in_dim, out_dim):
    ks = jax.random.split(key, 6)
    relu_gain = jnp.sqrt(2.0)
    xav_bound = relu_gain * jnp.sqrt(6.0 / (in_dim + out_dim))

    def xavier(k):  # stored as [D_in, D_out] (PyTorch W.T)
        return jax.random.uniform(k, (in_dim, out_dim), jnp.float32,
                                  -xav_bound, xav_bound)

    b_bound = 1.0 / jnp.sqrt(in_dim)

    def bias(k):
        return jax.random.uniform(k, (1, out_dim), jnp.float32, -b_bound, b_bound)

    return {
        "W_O": xavier(ks[0]), "b_O": bias(ks[1]),
        "W_I": xavier(ks[2]), "b_I": bias(ks[3]),
        "W_R": jax.random.uniform(ks[4], (in_dim, out_dim), jnp.float32,
                                  -b_bound, b_bound),
        "b_R": bias(ks[5]),
    }


# ---------------------------------- main -----------------------------------

if __name__ == "__main__":
    key = jax.random.PRNGKey(0)
    k_feat, k_rel, k_src, k_dst, k_et, k_par = jax.random.split(key, 6)

    n_nodes, n_edges, num_rels = 24, 100, 10
    in_dim, out_dim = 32, 32

    n_feats = jax.random.normal(k_feat, (n_nodes, in_dim), jnp.float32)
    r_feats = jax.random.normal(k_rel, (num_rels, in_dim), jnp.float32)
    src = jax.random.randint(k_src, (n_edges,), 0, n_nodes)
    dst = jax.random.randint(k_dst, (n_edges,), 0, n_nodes)
    etype = jax.random.randint(k_et, (n_edges,), 0, num_rels)
    params = init_params(k_par, in_dim, out_dim)

    fwd = jax.jit(comp_graph_conv_forward,
                  static_argnames=("num_rels", "block_e"))
    n_out, r_out = fwd(src, dst, etype, n_feats, r_feats,
                       num_rels=num_rels, params=params, block_e=32)
    n_out = jax.block_until_ready(n_out)
    r_out = jax.block_until_ready(r_out)

    # ------------------------- pure-JAX references -------------------------
    def segment_mean(vals, idx, n):
        s = jnp.zeros((n, vals.shape[1]), jnp.float32).at[idx].add(vals)
        d = jnp.zeros((n,), jnp.float32).at[idx].add(1.0)
        return s / jnp.maximum(d, 1.0)[:, None]

    comp_f32 = n_feats[src] - r_feats[etype]
    is_in = (etype < num_rels // 2)[:, None]

    # (a) matched-precision reference (bf16 operands, f32 accumulation): tight.
    comp_bf = comp_f32.astype(jnp.bfloat16).astype(jnp.float32)
    wi_bf = params["W_I"].astype(jnp.bfloat16).astype(jnp.float32)
    wo_bf = params["W_O"].astype(jnp.bfloat16).astype(jnp.float32)
    new_h_bf = jnp.where(is_in,
                         comp_bf @ wi_bf + params["b_I"],
                         comp_bf @ wo_bf + params["b_O"])
    n_ref_bf = segment_mean(new_h_bf, dst, n_nodes)
    assert jnp.allclose(n_out, n_ref_bf, atol=2e-3, rtol=2e-3)

    # (b) full-f32 module semantics: loose tolerance for bf16 MXU compute.
    new_h_f = jnp.where(is_in,
                        comp_f32 @ params["W_I"] + params["b_I"],
                        comp_f32 @ params["W_O"] + params["b_O"])
    n_ref_f = segment_mean(new_h_f, dst, n_nodes)
    assert jnp.allclose(n_out, n_ref_f, atol=1e-1, rtol=1e-1)

    r_ref = r_feats @ params["W_R"] + params["b_R"]
    assert jnp.allclose(r_out, r_ref, atol=1e-5, rtol=1e-5)

    print("KERNEL_OK")
</pallas_src>

<mosaic_0001>
module attributes {stable_mosaic.version = 11 : i64} {
  func.func @_edge_transform_kernel(%arg0: i32, %arg1: memref<32x128xbf16, #tpu.memory_space<vmem>>, %arg2: memref<32x1xi32, #tpu.memory_space<vmem>>, %arg3: memref<128x256xbf16, #tpu.memory_space<vmem>>, %arg4: memref<1x256xf32, #tpu.memory_space<vmem>>, %arg5: memref<32x128xf32, #tpu.memory_space<vmem>>) attributes {dimension_semantics = [#tpu.dimension_semantics<parallel>], iteration_bounds = array<i64: 4>, scalar_prefetch = 0 : i64, scratch_operands = 0 : i64, tpu.core_type = #tpu.core_type<tc>, window_params = [{transform_indices = @transform_0, window_bounds = array<i64: 32, 128>}, {transform_indices = @transform_1, window_bounds = array<i64: 32, 1>}, {pipeline_mode = #tpu.pipeline_mode<synchronous>, transform_indices = @transform_2, window_bounds = array<i64: 128, 256>}, {pipeline_mode = #tpu.pipeline_mode<synchronous>, transform_indices = @transform_3, window_bounds = array<i64: 1, 256>}, {transform_indices = @transform_4, window_bounds = array<i64: 32, 128>}]} {
    %c0 = arith.constant 0 : index
    %c0_0 = arith.constant 0 : index
    %0 = vector.load %arg1[%c0, %c0_0] : memref<32x128xbf16, #tpu.memory_space<vmem>>, vector<32x128xbf16>
    %c0_1 = arith.constant 0 : index
    %c0_2 = arith.constant 0 : index
    %1 = vector.load %arg3[%c0_1, %c0_2] : memref<128x256xbf16, #tpu.memory_space<vmem>>, vector<128x256xbf16>
    %cst = arith.constant dense<0.000000e+00> : vector<32x256xf32>
    %2 = tpu.matmul %0, %1, %cst {dimension_numbers = #tpu.dot_dimension_numbers<[1], [0], [0], [1], [0, 0, 1, 1], [], []>} : vector<32x128xbf16>, vector<128x256xbf16>, vector<32x256xf32> -> vector<32x256xf32>
    %c0_3 = arith.constant 0 : index
    %c0_4 = arith.constant 0 : index
    %3 = vector.load %arg4[%c0_3, %c0_4] : memref<1x256xf32, #tpu.memory_space<vmem>>, vector<1x256xf32>
    %4 = vector.broadcast %3 : vector<1x256xf32> to vector<32x256xf32>
    %5 = arith.addf %2, %4 : vector<32x256xf32>
    %6 = vector.extract_strided_slice %5 {offsets = [0, 0], sizes = [32, 128], strides = [1, 1]} : vector<32x256xf32> to vector<32x128xf32>
    %7 = vector.extract_strided_slice %5 {offsets = [0, 128], sizes = [32, 128], strides = [1, 1]} : vector<32x256xf32> to vector<32x128xf32>
    %c0_5 = arith.constant 0 : index
    %c0_6 = arith.constant 0 : index
    %8 = vector.load %arg2[%c0_5, %c0_6] : memref<32x1xi32, #tpu.memory_space<vmem>>, vector<32x1xi32>
    %9 = vector.shape_cast %8 : vector<32x1xi32> to vector<32x1xi32>
    %10 = vector.broadcast %9 : vector<32x1xi32> to vector<32x128xi32>
    %c0_i32 = arith.constant 0 : i32
    %11 = vector.broadcast %c0_i32 : i32 to vector<32x128xi32>
    %12 = arith.cmpi sgt, %10, %11 : vector<32x128xi32>
    %13 = arith.select %12, %6, %7 : vector<32x128xi1>, vector<32x128xf32>
    %c0_7 = arith.constant 0 : index
    %c0_8 = arith.constant 0 : index
    %14 = vector.load %arg5[%c0_7, %c0_8] : memref<32x128xf32, #tpu.memory_space<vmem>>, vector<32x128xf32>
    tpu.vector_store %arg5[%c0_7, %c0_8], %13 {strides = array<i32>} : memref<32x128xf32, #tpu.memory_space<vmem>>, vector<32x128xf32>,
    return
  }
  func.func @transform_0(%arg0: i32) -> (i32, i32) {
    %c0_i32 = arith.constant 0 : i32
    %c0_i32_0 = arith.constant 0 : i32
    return %arg0, %c0_i32 : i32, i32
  }
  func.func @transform_1(%arg0: i32) -> (i32, i32) {
    %c0_i32 = arith.constant 0 : i32
    %c0_i32_0 = arith.constant 0 : i32
    return %arg0, %c0_i32 : i32, i32
  }
  func.func @transform_2(%arg0: i32) -> (i32, i32) {
    %c0_i32 = arith.constant 0 : i32
    %c0_i32_0 = arith.constant 0 : i32
    %c0_i32_1 = arith.constant 0 : i32
    return %c0_i32, %c0_i32_0 : i32, i32
  }
  func.func @transform_3(%arg0: i32) -> (i32, i32) {
    %c0_i32 = arith.constant 0 : i32
    %c0_i32_0 = arith.constant 0 : i32
    %c0_i32_1 = arith.constant 0 : i32
    return %c0_i32, %c0_i32_0 : i32, i32
  }
  func.func @transform_4(%arg0: i32) -> (i32, i32) {
    %c0_i32 = arith.constant 0 : i32
    %c0_i32_0 = arith.constant 0 : i32
    return %arg0, %c0_i32 : i32, i32
  }
}

</mosaic_0001>

<bundles_post_ra>
// kernel: comp_graph_conv_forward.1
= control target key start
LH: loop header
LB: loop body
LE: loop exit
PB: predicated region body
PF: predicated region fallthrough
CT: control target
= control target key end

     0   :  { %s615_s15 = smov 0   ;;  %s698_s0 = inlined_call_operand.vmem [shape: bf16[128,128], index: 0, kind: input, shape index: {}]   ;;  %s699_s1 = inlined_call_operand.vmem [shape: s32[128,1], index: 1, kind: input, shape index: {}]   ;;  %s700_s2 = inlined_call_operand.vmem [shape: bf16[128,256], index: 2, kind: input, shape index: {}]   ;;  %s701_s3 = inlined_call_operand.vmem [shape: f32[1,256], index: 3, kind: input, shape index: {}]   ;;  %s702_s4 = inlined_call_operand.vmem [shape: f32[128,128], index: 4, kind: output, shape index: {}]  }
   0x1 LB: > { %s497_s16 = sadd.s32 4294967295, %s587_s15   ;;  %p501_p0 = scmp.ge.s32.totalorder %s587_s15, 1  ;;  %s587_s15 = sphi %s615_s15, %s14_s15  }
   0x2   : > { %p174_p1 = scmp.lt.s32.totalorder %s587_s15, 5 }
   0x4   : > { %p175_p2 = pnand %p501_p0, %p174_p1 }
   0x5   : > { %v555_v0 = vld [vmem:[%s700_s2 + $0x4] ss:$8 sps:$4 sm:$0xff] (!%p175_p2)   ;;  %s502_s19 = sshll.u32 (!%p175_p2), %s497_s16, 2  ;;  %v557_v1 = vld [vmem:[%s700_s2] ss:$8 sps:$4 sm:$0xff] (!%p175_p2)   ;;  %v589_v2 = vmov (!%p175_p2), 0   ;;  %v246_v23 = vlaneseq (!%p175_p2) }
   0x6   : > { %178 = sbr.rel (%p175_p2) target bundleno = 258 (0x102), region = 36  ;;  %380 = vmatprep.mubr.bf16.mxu0 (!%p175_p2), %v589_v2  ;;  %390 = vmatprep.mubr.bf16.mxu1 (!%p175_p2), %v589_v2  ;;  %p206_p3 = scmp.lt.s32.totalorder (!%p175_p2), %s502_s19, 15  ;;  %v558_v3 = vld [vmem:[%s700_s2 + $0x14] ss:$8 sps:$4 sm:$0xff] (!%p175_p2)   ;;  %v560_v4 = vld [vmem:[%s700_s2 + $0x10] ss:$8 sps:$4 sm:$0xff] (!%p175_p2)  }
   0x7   : > { %348 = vmatprep.subr.bf16.mxu0 (!%p175_p2), %v555_v0  ;;  %528 = vmatprep.subr.bf16.mxu1 (!%p175_p2), %v555_v0  ;;  %v561_v5 = vld [vmem:[%s700_s2 + $0x24] ss:$8 sps:$4 sm:$0xff] (!%p175_p2)   ;;  %v563_v6 = vld [vmem:[%s700_s2 + $0x20] ss:$8 sps:$4 sm:$0xff] (!%p175_p2)   ;;  %v564_v7 = vld [vmem:[%s700_s2 + $0x34] ss:$8 sps:$4 sm:$0xff] (!%p175_p2)  }
   0x8   : > { %349 = vmatpush1.bf16.msra.mxu0 (!%p175_p2), %v557_v1  ;;  %536 = vmatpush1.bf16.msra.mxu1 (!%p175_p2), %v557_v1  ;;  %v566_v8 = vld [vmem:[%s700_s2 + $0x30] ss:$8 sps:$4 sm:$0xff] (!%p175_p2)   ;;  %v567_v9 = vld [vmem:[%s700_s2 + $0x44] ss:$8 sps:$4 sm:$0xff] (!%p175_p2)   ;;  %v569_v13 = vld [vmem:[%s700_s2 + $0x40] ss:$8 sps:$4 sm:$0xff] (!%p175_p2)  }
   0x9   : > { %350 = vmatprep.subr.bf16.mxu0 (!%p175_p2), %v558_v3  ;;  %529 = vmatprep.subr.bf16.mxu1 (!%p175_p2), %v558_v3  ;;  %v570_v15 = vld [vmem:[%s700_s2 + $0x54] ss:$8 sps:$4 sm:$0xff] (!%p175_p2)   ;;  %v572_v16 = vld [vmem:[%s700_s2 + $0x50] ss:$8 sps:$4 sm:$0xff] (!%p175_p2)   ;;  %v573_v17 = vld [vmem:[%s700_s2 + $0x64] ss:$8 sps:$4 sm:$0xff] (!%p175_p2)  }
   0xa   : > { %554 = vset.pattern.permute.xlu1 (!%p175_p2), %v589_v2  ;;  %553 = vset.pattern.permute.xlu0 (!%p175_p2), %v589_v2  ;;  %v575_v18 = vld [vmem:[%s700_s2 + $0x60] ss:$8 sps:$4 sm:$0xff] (!%p175_p2)   ;;  %v576_v19 = vld [vmem:[%s700_s2 + $0x74] ss:$8 sps:$4 sm:$0xff] (!%p175_p2)   ;;  %v578_v20 = vld [vmem:[%s700_s2 + $0x70] ss:$8 sps:$4 sm:$0xff] (!%p175_p2)  }
   0xb   : > { %v247_v24 = vshrl.u32 (!%p175_p2), %v246_v23, 7  ;;  %v244_v28 = vld [vmem:[%s701_s3] sm:$0x3] (!%p175_p2) }
   0xc   : > { %351 = vmatpush1.bf16.msra.mxu0 (!%p175_p2), %v560_v4  ;;  %537 = vmatpush1.bf16.msra.mxu1 (!%p175_p2), %v560_v4 }
   0xd   : > { %s704_s19 = smov (!%p206_p3, %s502_s19), 15  ;;  %352 = vmatprep.subr.bf16.mxu0 %v561_v5  ;;  %530 = vmatprep.subr.bf16.mxu1 %v561_v5  ;;  %v248_v27 = vsub.s32 0, %v247_v24  ;;  %v252_v29 = vsub.s32 1, %v247_v24 }
   0xe   : > { %s503_s28 = sshll.u32 %s704_s19, 2  ;;  %s505_s29 = sshll.u32 %s704_s19, 3 }
   0xf   : > { %s651_s10 = scalar_lea.vmem %s698_s0, %s503_s28  ;;  %s215_s13 = scalar_lea.vmem %s699_s1, %s505_s29  ;;  %v249_v30 = vrot.slane %v244_v28, %v248_v27  ;;  %v253_v31 = vrot.slane %v244_v28, %v252_v29 }
  0x10   : > { %353 = vmatpush1.bf16.msra.mxu0 %v563_v6  ;;  %538 = vmatpush1.bf16.msra.mxu1 %v563_v6  ;;  %v403_v10 = vld [vmem:[%s215_s13 + $0x10] sm:$0xff]  ;;  %v401_v11 = vld [vmem:[%s215_s13] sm:$0xff]  ;;  %v404_v12 = vld [vmem:[%s215_s13 + $0x18] sm:$0xff] }
  0x11   : > { %354 = vmatprep.subr.bf16.mxu0 %v564_v7  ;;  %531 = vmatprep.subr.bf16.mxu1 %v564_v7  ;;  %v402_v14 = vld [vmem:[%s215_s13 + $0x8] sm:$0xff]  ;;  %v579_v21 = vld [vmem:[%s651_s10] sm:$0xff]   ;;  %s221_s13 = scalar_lea.vmem %s702_s4, %s505_s29 }
  0x12   : > { %412 = vperm.xlu1 %554, %v403_v10   ;;  %406 = vperm.xlu0 %553, %v401_v11   ;;  %v580_v22 = vld [vmem:[%s651_s10 + $0x8] sm:$0xff]  }
  0x14   : > { %355 = vmatpush1.bf16.msra.mxu0 %v566_v8  ;;  %539 = vmatpush1.bf16.msra.mxu1 %v566_v8 }
  0x15   : > { %356 = vmatprep.subr.bf16.mxu0 %v567_v9  ;;  %532 = vmatprep.subr.bf16.mxu1 %v567_v9 }
  0x16   : > { %415 = vperm.xlu1 %554, %v404_v12   ;;  %409 = vperm.xlu0 %553, %v402_v14  }
  0x18   : > { %357 = vmatpush1.bf16.msra.mxu0 %v569_v13  ;;  %540 = vmatpush1.bf16.msra.mxu1 %v569_v13 }
  0x19   : > { %358 = vmatprep.subr.bf16.mxu0 %v570_v15  ;;  %533 = vmatprep.subr.bf16.mxu1 %v570_v15 }
  0x1c   : > { %359 = vmatpush1.bf16.msra.mxu0 %v572_v16  ;;  %541 = vmatpush1.bf16.msra.mxu1 %v572_v16 }
  0x1d   : > { %360 = vmatprep.subr.bf16.mxu0 %v573_v17  ;;  %534 = vmatprep.subr.bf16.mxu1 %v573_v17 }
  0x20   : > { %361 = vmatpush1.bf16.msra.mxu0 %v575_v18  ;;  %542 = vmatpush1.bf16.msra.mxu1 %v575_v18 }
  0x21   : > { %362 = vmatprep.subr.bf16.mxu0 %v576_v19  ;;  %535 = vmatprep.subr.bf16.mxu1 %v576_v19 }
  0x24   : > { %363 = vmatpush1.bf16.msra.mxu0 %v578_v20  ;;  %543 = vmatpush1.bf16.msra.mxu1 %v578_v20 }
  0x27   : > { %381 = vmatmul.mubr.bf16.vlgmr.msra.gmra.mrb[0].mxu0 %v579_v21  ;;  %391 = vmatmul.mubr.bf16.vlgmr.msra.gmra.mrb[0].mxu1 %v580_v22 }
  0x91   : > { %v413_v25 = vpop.permute.xlu1 %412  ;;  %v407_v26 = vpop.permute.xlu0 %406 }
  0x92   : > { %vm419_vm0 = vcmp.gt.s32.totalorder %v413_v25, 0  ;;  %vm417_vm1 = vcmp.gt.s32.totalorder %v407_v26, 0 }
  0x95   : > { %v416_v32 = vpop.permute.xlu1 %415  ;;  %v410_v33 = vpop.permute.xlu0 %409 }
  0x96   : > { %vm420_vm2 = vcmp.gt.s32.totalorder %v416_v32, 0  ;;  %vm418_vm3 = vcmp.gt.s32.totalorder %v410_v33, 0 }
  0xfa   : > { %v382_v34 = vpop.f32.mrb[0].mxu0  ;;  %v392_v35 = vpop.f32.mrb[0].mxu1 }
  0xfb   : > { %v383_v36 = vadd.f32 %v382_v34, %v249_v30  ;;  %v393_v37 = vadd.f32 %v392_v35, %v249_v30  ;;  %v384_v38 = vpop.f32.mrb[1].mxu0  ;;  %v394_v39 = vpop.f32.mrb[1].mxu1 }
  0xfc   : > { %v385_v40 = vadd.f32 %v384_v38, %v253_v31  ;;  %v395_v41 = vadd.f32 %v394_v39, %v253_v31  ;;  %v386_v42 = vpop.f32.mrb[2].mxu0  ;;  %v396_v43 = vpop.f32.mrb[2].mxu1 }
  0xfd   : > { %v387_v44 = vadd.f32 %v386_v42, %v249_v30  ;;  %v397_v45 = vadd.f32 %v396_v43, %v249_v30  ;;  %v388_v46 = vpop.f32.mrb[3].mxu0  ;;  %v398_v47 = vpop.f32.mrb[3].mxu1 }
  0xfe   : > { %v421_v48 = vsel %vm417_vm1, %v383_v36, %v385_v40  ;;  %v423_v49 = vsel %vm419_vm0, %v393_v37, %v395_v41  ;;  %v389_v50 = vadd.f32 %v388_v46, %v253_v31  ;;  %v399_v51 = vadd.f32 %v398_v47, %v253_v31 }
  0xff   : > { %425 = vst [vmem:[%s221_s13] sm:$0xff] %v421_v48  ;;  %427 = vst [vmem:[%s221_s13 + $0x10] sm:$0xff] %v423_v49 }
 0x100   : > { %v422_v52 = vsel %vm418_vm3, %v387_v44, %v389_v50  ;;  %v424_v53 = vsel %vm420_vm2, %v397_v45, %v399_v51 }
 0x101   : > { %426 = vst [vmem:[%s221_s13 + $0x8] sm:$0xff] %v422_v52  ;;  %428 = vst [vmem:[%s221_s13 + $0x18] sm:$0xff] %v424_v53 }
 0x102 PF: > { %s14_s15 = sadd.s32 1, %s587_s15  }
 0x103   : > { %p11_p4 = scmp.ge.s32.totalorder %s14_s15, 6  }
 0x105   :  { %13 = sbr.rel (!%p11_p4) target bundleno = 1 (0x1), region = 69 }

</bundles_post_ra>
